<compile_context>
chip_gen: v6e
topology: v6e:2x2x1
jax: 0.10.0
libtpu: 0.0.40
codegen_flags: <defaults>
</compile_context>

<pallas_src>
import functools

import jax
import jax.numpy as jnp
from jax import lax
from jax.experimental import pallas as pl
from jax.experimental.pallas import tpu as pltpu

_MiB = 1024 * 1024


def _round_up(x, m):
    return ((x + m - 1) // m) * m


def _tpu_generation():
    """Returns (physical_vmem_bytes, two_tensorcores_per_chip, bf16_transcendentals)."""
    phys = 64 * _MiB                      # conservative default (v7x-class)
    try:
        phys = int(pltpu.get_tpu_info().vmem_capacity_bytes)
    except Exception:
        pass
    kind = ""
    try:
        kind = jax.devices()[0].device_kind.lower()
    except Exception:
        pass
    is_old = any(t in kind for t in ("v2", "v3", "v4", "v5"))
    two_cores = (not is_old) and (("7" in kind) or phys <= 80 * _MiB)
    bf16_eup = not is_old                 # v6e/v7x have bf16 VPU/EUP; v5e does not
    return phys, two_cores, bf16_eup


def _per_batch_bytes(Lp, Hp, tq, bf16_exp, out_itemsize):
    # Tight footprint: double-buffered x / out / mask tiles plus the only large
    # temporaries (f32 score tile + exp result).
    x_buf = 2 * Lp * Hp * 2                           # bf16 x, double-buffered
    o_buf = 2 * tq * Hp * out_itemsize                # output tile, double-buffered
    m_buf = 2 * Lp * 4                                # additive mask, double-buffered
    temps = tq * Lp * (4 + (2 if bf16_exp else 4))    # scores f32 + exp result
    return x_buf + o_buf + m_buf + temps


def _self_attn_kernel(x_ref, mneg_ref, o_ref, *, tq, bf16_softmax):
    # x_ref:    (BB, Lp, Hp) bf16  -- full (padded) sequence: keys/values AND queries
    # mneg_ref: (BB, 1,  Lp) f32   -- additive column mask: 0.0 (keep) or -inf (masked)
    # o_ref:    (BB, tq, Hp)       -- output tile for the current query block
    kv = x_ref[...]                                    # (BB, Lp, Hp) bf16
    _, lp, _ = kv.shape

    q_blk = pl.program_id(1)
    if tq == lp:
        q = kv                                         # single query tile: reuse the load
    else:
        q_start = pl.multiple_of(q_blk * tq, tq)
        q = x_ref[:, pl.ds(q_start, tq), :]            # (BB, tq, Hp) bf16

    # scores = q @ kv^T: contract last dims (no materialized transpose),
    # batched over the batch-block dim; f32 accumulation on the MXU.
    scores = lax.dot_general(
        q, kv,
        dimension_numbers=(((2,), (2,)), ((0,), (0,))),
        preferred_element_type=jnp.float32)            # (BB, tq, Lp) f32

    # Zero the diagonal (global query row == key column), then apply the column
    # mask additively with -inf.  Order matches PyTorch: diagonal first, mask wins.
    row = lax.broadcasted_iota(jnp.int32, (tq, lp), 0) + q_blk * tq
    col = lax.broadcasted_iota(jnp.int32, (tq, lp), 1)
    scores = jnp.where((row == col)[None, :, :], jnp.float32(0.0), scores)
    scores = scores + mneg_ref[...]                    # broadcast (BB, 1, Lp)

    # Softmax over the key axis; fold 1/sum into the small (tq, Hp) output
    # instead of dividing the full (tq, Lp) score tile.
    mx = jnp.max(scores, axis=-1, keepdims=True)
    if bf16_softmax:
        # v6e/v7x: bf16 EUP exp (~2x rate) and no separate f32->bf16 cast pass.
        p = jnp.exp((scores - mx).astype(jnp.bfloat16))          # (BB, tq, Lp) bf16
        s = jnp.sum(p.astype(jnp.float32), axis=-1, keepdims=True)
    else:
        e = jnp.exp(scores - mx)                                  # f32 (v5e path)
        s = jnp.sum(e, axis=-1, keepdims=True)
        p = e.astype(jnp.bfloat16)

    pv = lax.dot_general(
        p, kv,
        dimension_numbers=(((2,), (1,)), ((0,), (0,))),
        preferred_element_type=jnp.float32)            # (BB, tq, Hp) f32

    o_ref[...] = (pv * pl.reciprocal(s, approx=True)).astype(o_ref.dtype)


def self_attention_unit(x, x_mask, *, output_dtype=None, bf16_softmax=None):
    """x: (B, L, H) float, x_mask: (B, L) bool (True => masked) -> (B, L, H)."""
    B, L, H = x.shape
    out_dtype = output_dtype if output_dtype is not None else x.dtype
    out_itemsize = jnp.dtype(out_dtype).itemsize

    phys, two_cores, bf16_eup = _tpu_generation()
    if bf16_softmax is None:
        bf16_softmax = bf16_eup            # bf16 exp only where the EUP supports it
    # ~96 MiB scoped on v5e/v6e (128 MiB physical), ~48 MiB on v7x (64 MiB/TC).
    budget = max(24 * _MiB, (phys * 3) // 4)

    # ---- padded / tiled geometry -------------------------------------------
    Hp = _round_up(H, 128)                 # lane-dense last dim (unmasked stores)
    if L >= 64:
        Lp = _round_up(L, 128)             # lane-dense softmax + full MXU tiles
    else:
        Lp = _round_up(max(L, 16), 16)     # bf16 sublane pack; keep tiny L cheap

    tq_candidates = (1024, 512, 256) if budget >= 80 * _MiB else (512, 256)
    if Lp <= tq_candidates[0]:
        tq = Lp
    else:
        tq = tq_candidates[-1]
        for cand in tq_candidates:         # largest tq whose per-batch tiles fit
            Lp_c = _round_up(Lp, cand)
            if _per_batch_bytes(Lp_c, Hp, cand, bf16_softmax, out_itemsize) <= budget:
                tq = cand
                break
        Lp = _round_up(Lp, tq)
        # TODO(synk): flash-style key-tiled online softmax once even tq=256 overflows.
    nq = Lp // tq

    # Batch blocking: biggest lever at small/medium L.
    per_batch = _per_batch_bytes(Lp, Hp, tq, bf16_softmax, out_itemsize)
    bb = max(1, min(B, budget // per_batch))
    if B >= 2:
        # v7x: keep >= ~4 batch steps so both TensorCores get work;
        # single-TC chips: just keep >= 2 steps so the DMA pipeline can overlap.
        min_steps = 4 if two_cores else 2
        bb = max(1, min(bb, -(-B // min(min_steps, B))))
    Bp = _round_up(B, bb)
    nb = Bp // bb

    # Scoped-VMEM limit from the actual footprint (+ margin), capped under physical.
    vmem_limit = int(max(32 * _MiB, min(phys - 16 * _MiB, bb * per_batch + 16 * _MiB)))

    # ---- padded operands -----------------------------------------------------
    # Cast to bf16 BEFORE padding so the materialized padded copy is half-size.
    x_bf = jnp.pad(x.astype(jnp.bfloat16), ((0, Bp - B), (0, Lp - L), (0, Hp - H)))

    neg_inf = jnp.float32(-jnp.inf)
    mask_p = jnp.pad(x_mask.astype(bool), ((0, Bp - B), (0, Lp - L)),
                     constant_values=False)
    pad_col = (jnp.arange(Lp) >= L)[None, :]          # padded key columns are masked
    mneg = jnp.where(mask_p | pad_col, neg_inf, jnp.float32(0.0)).reshape(Bp, 1, Lp)

    kernel = functools.partial(_self_attn_kernel, tq=tq, bf16_softmax=bf16_softmax)

    # x's block index is (b, 0, 0): resident across q.  Shard the batch axis
    # across TensorCores (don't duplicate the x DMA); only q-parallel if nb == 1.
    dims = ("parallel", "arbitrary") if nb >= 2 else ("arbitrary", "parallel")

    cost = pl.CostEstimate(
        flops=4 * Bp * Lp * Lp * Hp,                  # two batched matmuls
        transcendentals=Bp * Lp * Lp,                 # exp over the score tiles
        bytes_accessed=Bp * Lp * Hp * 2               # bf16 x read (resident across q)
        + Bp * Lp * 4                                 # additive mask read
        + Bp * Lp * Hp * out_itemsize,                # output write
    )

    out_p = pl.pallas_call(
        kernel,
        out_shape=jax.ShapeDtypeStruct((Bp, Lp, Hp), out_dtype),
        grid=(nb, nq),
        in_specs=[
            pl.BlockSpec((bb, Lp, Hp), lambda b, q: (b, 0, 0)),   # x (keys/values/queries)
            pl.BlockSpec((bb, 1, Lp), lambda b, q: (b, 0, 0)),    # additive mask
        ],
        out_specs=pl.BlockSpec((bb, tq, Hp), lambda b, q: (b, q, 0)),
        compiler_params=pltpu.CompilerParams(
            dimension_semantics=dims,
            vmem_limit_bytes=vmem_limit,
        ),
        cost_estimate=cost,
    )(x_bf, mneg)

    return out_p[:B, :L, :H]


def _reference(x, x_mask):
    # Pure-JAX reference mirroring the PyTorch forward exactly (f32 math).
    scores = jnp.einsum("blh,bmh->blm", x, x)
    L = x.shape[1]
    eye = jnp.eye(L, dtype=bool)
    scores = jnp.where(eye[None, :, :], 0.0, scores)
    scores = jnp.where(x_mask[:, None, :], -jnp.inf, scores)
    a = jax.nn.softmax(scores, axis=2)
    return jnp.einsum("blm,bmh->blh", a, x)


if __name__ == "__main__":
    B, L, H = 2, 8, 32
    key = jax.random.PRNGKey(0)
    kx, _ = jax.random.split(key)
    x = jax.random.normal(kx, (B, L, H), dtype=jnp.float32)

    # Deterministic mask: mask out the last few positions of each sequence
    # (no row ends up fully masked, so softmax is well defined).
    pos = jnp.arange(L)
    x_mask = jnp.stack([pos >= 6, pos >= 5])       # (B, L) bool, True = masked

    out = self_attention_unit(x, x_mask)
    jax.block_until_ready(out)

    assert out.shape == (B, L, H)
    assert bool(jnp.all(jnp.isfinite(out)))

    # Reference computed from the same bf16-quantized inputs (the kernel casts
    # MXU operands to bf16 by design); remaining error is f32-accumulated bf16
    # matmuls, bf16-exp softmax on v6e/v7x, and the approx reciprocal.
    x_q = x.astype(jnp.bfloat16).astype(jnp.float32)
    ref = _reference(x_q, x_mask)
    assert jnp.allclose(out, ref, atol=2e-2, rtol=2e-2), \
        float(jnp.max(jnp.abs(out - ref)))

    print("KERNEL_OK")
</pallas_src>

<mosaic_0001>
module attributes {stable_mosaic.version = 11 : i64} {
  func.func @_self_attn_kernel(%arg0: i32, %arg1: i32, %arg2: memref<1x16x128xbf16, #tpu.memory_space<vmem>>, %arg3: memref<1x1x16xf32, #tpu.memory_space<vmem>>, %arg4: memref<1x16x128xf32, #tpu.memory_space<vmem>>) attributes {dimension_semantics = [#tpu.dimension_semantics<parallel>, #tpu.dimension_semantics<arbitrary>], iteration_bounds = array<i64: 2, 1>, scalar_prefetch = 0 : i64, scratch_operands = 0 : i64, tpu.core_type = #tpu.core_type<tc>, window_params = [{transform_indices = @transform_0, window_bounds = array<i64: 1, 16, 128>}, {transform_indices = @transform_1, window_bounds = array<i64: 1, 1, 16>}, {transform_indices = @transform_2, window_bounds = array<i64: 1, 16, 128>}]} {
    %c0 = arith.constant 0 : index
    %c0_0 = arith.constant 0 : index
    %c0_1 = arith.constant 0 : index
    %0 = vector.load %arg2[%c0, %c0_0, %c0_1] : memref<1x16x128xbf16, #tpu.memory_space<vmem>>, vector<1x16x128xbf16>
    %cst = arith.constant dense<0.000000e+00> : vector<1x16x16xf32>
    %1 = tpu.matmul %0, %0, %cst {dimension_numbers = #tpu.dot_dimension_numbers<[2], [2], [1], [1], [0, 0, 0, 1, 1, 1], [0], [0]>} : vector<1x16x128xbf16>, vector<1x16x128xbf16>, vector<1x16x16xf32> -> vector<1x16x16xf32>
    %2 = tpu.iota {dimensions = array<i32: 0>} : vector<16x16xi32>
    %c16_i32 = arith.constant 16 : i32
    %3 = arith.muli %arg1, %c16_i32 : i32
    %4 = vector.broadcast %3 : i32 to vector<16x16xi32>
    %5 = arith.addi %2, %4 : vector<16x16xi32>
    %6 = tpu.iota {dimensions = array<i32: 1>} : vector<16x16xi32>
    %7 = arith.cmpi eq, %5, %6 : vector<16x16xi32>
    %8 = vector.shape_cast %7 : vector<16x16xi1> to vector<1x16x16xi1>
    %cst_2 = arith.constant 0.000000e+00 : f32
    %9 = vector.broadcast %cst_2 : f32 to vector<1x16x16xf32>
    %10 = arith.select %8, %9, %1 : vector<1x16x16xi1>, vector<1x16x16xf32>
    %c0_3 = arith.constant 0 : index
    %c0_4 = arith.constant 0 : index
    %c0_5 = arith.constant 0 : index
    %11 = vector.load %arg3[%c0_3, %c0_4, %c0_5] : memref<1x1x16xf32, #tpu.memory_space<vmem>>, vector<1x1x16xf32>
    %12 = vector.broadcast %11 : vector<1x1x16xf32> to vector<1x16x16xf32>
    %13 = arith.addf %10, %12 : vector<1x16x16xf32>
    %cst_6 = arith.constant dense<0xFF800000> : vector<1x16xf32>
    %14 = vector.multi_reduction <maximumf>, %13, %cst_6 [2] : vector<1x16x16xf32> to vector<1x16xf32>
    %15 = vector.shape_cast %14 : vector<1x16xf32> to vector<1x16x1xf32>
    %16 = vector.broadcast %15 : vector<1x16x1xf32> to vector<1x16x16xf32>
    %17 = arith.subf %13, %16 : vector<1x16x16xf32>
    %18 = arith.truncf %17 : vector<1x16x16xf32> to vector<1x16x16xbf16>
    %19 = math.exp %18 : vector<1x16x16xbf16>
    %20 = arith.extf %19 : vector<1x16x16xbf16> to vector<1x16x16xf32>
    %cst_7 = arith.constant dense<0.000000e+00> : vector<1x16xf32>
    %21 = vector.multi_reduction <add>, %20, %cst_7 [2] : vector<1x16x16xf32> to vector<1x16xf32>
    %22 = vector.shape_cast %21 : vector<1x16xf32> to vector<1x16x1xf32>
    %cst_8 = arith.constant dense<0.000000e+00> : vector<1x16x128xf32>
    %23 = tpu.matmul %19, %0, %cst_8 {dimension_numbers = #tpu.dot_dimension_numbers<[2], [1], [1], [2], [0, 0, 0, 1, 1, 2], [0], [0]>} : vector<1x16x16xbf16>, vector<1x16x128xbf16>, vector<1x16x128xf32> -> vector<1x16x128xf32>
    %24 = tpu.reciprocal %22 {approx = true} : vector<1x16x1xf32> -> vector<1x16x1xf32>
    %25 = vector.broadcast %24 : vector<1x16x1xf32> to vector<1x16x128xf32>
    %26 = arith.mulf %23, %25 : vector<1x16x128xf32>
    %c0_9 = arith.constant 0 : index
    %c0_10 = arith.constant 0 : index
    %c0_11 = arith.constant 0 : index
    %27 = vector.load %arg4[%c0_9, %c0_10, %c0_11] : memref<1x16x128xf32, #tpu.memory_space<vmem>>, vector<1x16x128xf32>
    tpu.vector_store %arg4[%c0_9, %c0_10, %c0_11], %26 {strides = array<i32>} : memref<1x16x128xf32, #tpu.memory_space<vmem>>, vector<1x16x128xf32>,
    return
  }
  func.func @transform_0(%arg0: i32, %arg1: i32) -> (i32, i32, i32) {
    %c0_i32 = arith.constant 0 : i32
    %c0_i32_0 = arith.constant 0 : i32
    %c0_i32_1 = arith.constant 0 : i32
    return %arg0, %c0_i32, %c0_i32_0 : i32, i32, i32
  }
  func.func @transform_1(%arg0: i32, %arg1: i32) -> (i32, i32, i32) {
    %c0_i32 = arith.constant 0 : i32
    %c0_i32_0 = arith.constant 0 : i32
    %c0_i32_1 = arith.constant 0 : i32
    return %arg0, %c0_i32, %c0_i32_0 : i32, i32, i32
  }
  func.func @transform_2(%arg0: i32, %arg1: i32) -> (i32, i32, i32) {
    %c0_i32 = arith.constant 0 : i32
    %c0_i32_0 = arith.constant 0 : i32
    return %arg0, %arg1, %c0_i32 : i32, i32, i32
  }
}

</mosaic_0001>

<bundles_post_ra>
// kernel: tpu_custom_call.1
= control target key start
LH: loop header
LB: loop body
LE: loop exit
PB: predicated region body
PF: predicated region fallthrough
CT: control target
= control target key end

     0   :  { %7 = vsyncpa [#allocation3], 0  ;;  %s939_s0 = inlined_call_operand.hbm [shape: bf16[2,16,128], index: 0, kind: input, shape index: {}]   ;;  %s940_s1 = inlined_call_operand.hbm [shape: f32[2,1,16], index: 1, kind: input, shape index: {}]   ;;  %s941_s2 = inlined_call_operand.hbm [shape: f32[2,16,128], index: 2, kind: output, shape index: {}]  }
   0x1   :  { %9 = vsyncpa [#allocation3 + $0x1], 0 }
   0x2   :  { %10 = vsyncpa [#allocation6], 0 }
   0x3   :  { %12 = vsyncpa [#allocation6 + $0x1], 0 }
   0x4   :  { %13 = vsyncpa [#allocation4], 0 }
   0x5   :  { %15 = vsyncpa [#allocation4 + $0x1], 0  ;;  %s757_s9 = smov 0   ;;  %s759_s10 = smov 0  }
   0x6   :  { %s761_s11 = smov 0   ;;  %s763_s12 = smov 0  }
   0x7   :  { %s765_s13 = smov 0   ;;  %s767_s14 = smov 0  }
   0x8 LB: > { %s474_s15 = sadd.s32 4294967295, %s731_s14   ;;  %s475_s16 = sadd.s32 4294967294, %s731_s14   ;;  %s731_s14 = sphi %s767_s14, %s21_s14   ;;  %s727_s13 = sphi %s765_s13, %s952_s13   ;;  %s723_s12 = sphi %s763_s12, %s951_s12   ;;  %s719_s11 = sphi %s761_s11, %s950_s11   ;;  %s715_s10 = sphi %s759_s10, %s949_s10   ;;  %s711_s9 = sphi %s757_s9, %s948_s9  }
   0x9   : > { %s33_s17 = sadd.s32 1, %s727_s13  ;;  %s40_s18 = sadd.s32 1, %s719_s11 }
   0xa   : > { %p35_p0 = scmp.ge.s32.totalorder %s33_s17, 2  ;;  %p47_p1 = scmp.ne.s32.totalorder %s719_s11, %s715_s10 }
   0xb   : > { %p48_p2 = scmp.eq.s32.totalorder %s731_s14, 0  ;;  %p53_p3 = scmp.ne.s32.totalorder %s715_s10, %s711_s9 }
   0xc   : > { %s954_s17 = smov (%p35_p0, %s33_s17), 0  ;;  %p54_p5 = scmp.eq.s32.totalorder %s474_s15, 0 }
   0xd   : > { %p798_p4 = por %p48_p2, %p47_p1  ;;  %s37_s20 = ssub.s32 %s727_s13, %s954_s17 }
   0xe   : > { %p105_p6 = scmp.eq.s32.totalorder %s474_s15, 1  ;;  %p38_p7 = scmp.eq.s32.totalorder %s37_s20, 0 }
   0xf   : > { %p804_p8 = por %p54_p5, %p53_p3  ;;  %p111_p10 = scmp.eq.s32.totalorder %s475_s16, 1 }
  0x10   : > { %p808_p9 = por %p105_p6, %p47_p1  ;;  %p477_p12 = scmp.ge.s32.totalorder %s731_s14, 2 }
  0x11   : > { %s813_s23 = scalar_select %p38_p7, %s719_s11, %s40_s18  }
  0x12   : > { %p815_p11 = por %p111_p10, %p53_p3  ;;  %p528_p13 = scmp.lt.s32.totalorder %s731_s14, 2 }
  0x13   : > { %s822_s25 = sand.u32 1, %s719_s11   ;;  %s493_s27 = sshll.u32 %s727_s13, 7 }
  0x14   : > { %s478_s26 = sshll.u32 %s822_s25, 3  ;;  %s141_s30 = scalar_lea.hbm %s939_s0, %s493_s27 }
  0x15   : > { %s135_s3 = scalar_lea.vmem [#allocation2], %s478_s26  ;;  %p831_p0 = pnand %p528_p13, %p798_p4 }
  0x16   : > { %s142_s4 = sshll.u32 %s135_s3, 4  ;;  %p482_p1 = scmp.ge.s32.totalorder %s731_s14, 1  ;;  %s143_s4 = int_to_ptr.vmem [resolvable:$true] %s142_s4 }
  0x17   : > { %s132_s6 = scalar_lea.sflag [#allocation3], %s822_s25  ;;  %p593_p2 = pneg %p831_p0 }
  0x18   : > { %s604_s7 = scalar_lea.vmem %s143_s4, 128  ;;  %s733_s8 = smov [#allocation2]  }
  0x19   : > { %p605_p3 = scmp.ne.s32.totalorder %s143_s4, %s604_s7  ;;  %s609_s15 = sshll.u32 %s733_s8, 4  ;;  %s610_s15 = int_to_ptr.vmem [resolvable:$false] %s609_s15 }
  0x1a   : > { %s611_s16 = scalar_lea.vmem %s610_s15, 256  ;;  %p612_p4 = scmp.lt.s32.totalorder %s143_s4, %s610_s15 }
  0x1b   : > { %p607_p5 = pnand %p605_p3, %p593_p2  ;;  %p613_p7 = scmp.lt.s32.totalorder %s611_s16, %s604_s7 }
  0x1d   : > { %p608_p6 = pneg %p607_p5  ;;  %p614_p10 = por %p613_p7, %p612_p4 }
  0x1f   : > { %p615_p13 = pnand %p614_p10, %p608_p6 }
  0x21   : > { %618 = shalt.err (!%p615_p13)
}
  0x22   : > { %s734_s18 = smov 64   ;;  %s735_s19 = smov 4  }
  0x23   : > { %520 = dma.hbm_to_vmem [thread:$0]  (!%p831_p0), %s141_s30, 128, %s143_s4, %s132_s6, %s734_s18, %s734_s18, %s735_s19  }
  0x24   : > { %p167_p3 = scmp.lt.s32.totalorder %s731_s14, 3  ;;  %s481_s20 = sshll.u32 %s727_s13, 4 }
  0x25   : > { %s160_s29 = scalar_lea.hbm %s940_s1, %s481_s20  ;;  %s155_s3 = scalar_lea.vmem [#allocation5], %s822_s25 }
  0x26   : > { %p848_p5 = pnand %p482_p1, %p167_p3  ;;  %s162_s7 = sshll.u32 %s155_s3, 4  ;;  %s163_s7 = int_to_ptr.vmem [resolvable:$true] %s162_s7 }
  0x27   : > { %s153_s8 = scalar_lea.sflag [#allocation6], %s822_s25  ;;  %s632_s15 = scalar_lea.vmem %s163_s7, 16 }
  0x28   : > { %p633_p6 = scmp.ne.s32.totalorder %s163_s7, %s632_s15  ;;  %s736_s30 = smov [#allocation5]  }
  0x29   : > { %s637_s4 = sshll.u32 %s736_s30, 4  ;;  %s638_s4 = int_to_ptr.vmem [resolvable:$false] %s637_s4 }
  0x2a   : > { %p635_p4 = pnand %p633_p6, %p593_p2  ;;  %s639_s6 = scalar_lea.vmem %s638_s4, 32 }
  0x2b   : > { %p640_p1 = scmp.lt.s32.totalorder %s163_s7, %s638_s4  ;;  %p641_p10 = scmp.lt.s32.totalorder %s639_s6, %s632_s15 }
  0x2c   : > { %p636_p7 = pneg %p635_p4 }
  0x2d   : > { %p642_p13 = por %p641_p10, %p640_p1 }
  0x2f   : > { %p643_p3 = pnand %p642_p13, %p636_p7 }
  0x31   : > { %646 = shalt.err (!%p643_p3)
}
  0x32   : > { %523 = dma.hbm_to_vmem [thread:$0]  (!%p831_p0), %s160_s29, 16, %s163_s7, %s153_s8  }
  0x33   : > { %171 = sbr.rel (%p848_p5) target bundleno = 642 (0x282), region = 28  ;;  %s865_s25 = sand.u32 (!%p848_p5), 1, %s715_s10  }
  0x34   : > { %s483_s16 = sshll.u32 (!%p848_p5), %s865_s25, 3  ;;  %s174_s18 = scalar_lea.sflag (!%p848_p5), [#allocation3], %s865_s25 }
  0x35   : > { %s177_s19 = scalar_lea.vmem (!%p848_p5), [#allocation2], %s483_s16 }
  0x38   : > { %698 = dma.done.wait (%p804_p8), %s174_s18, 128  }
  0x39   : > { %700 = vsyncadd (%p804_p8), %s174_s18, 4294967168  ;;  %s183_s5 = scalar_lea.sflag [#allocation6], %s865_s25  ;;  %s185_s20 = scalar_lea.vmem [#allocation5], %s865_s25 }
  0x3a   : > { %702 = dma.done.wait (%p804_p8), %s183_s5, 16  }
  0x3b   : > { %704 = vsyncadd (%p804_p8), %s183_s5, 4294967280  ;;  %v737_v0 = vmov 0.0   ;;  %vm738_vm0 = vmmov 0   ;;  %v584_v1 = vld [vmem:[%s177_s19] sm:$0xff]   ;;  %v261_v2 = vlaneseq  ;;  %vm283_vm2 = vcmask 130048   ;;  %s484_s21 = sshll.u32 %s865_s25, 4 }
  0x3c   : > { %499 = vmatprep.subr.bf16.mxu0 %v737_v0  ;;  %501 = vmatprep.mubr.msk.bf16.mxu0 %vm738_vm0, %v737_v0  ;;  %v486_v6 = vld [vmem:[%s185_s20] ss:$0 sm:$0xff]  ;;  %s209_s26 = scalar_lea.vmem [#allocation7], %s484_s21  ;;  %s494_s28 = sshll.u32 %s723_s12, 8 }
  0x3d   : > { %505 = vmatprep.subr.bf16.mxu1 %v737_v0  ;;  %507 = vmatprep.mubr.msk.bf16.mxu1 %vm738_vm0, %v737_v0  ;;  %v262_v3 = vshrl.u32 %v261_v2, 7  ;;  %v269_v4 = vand.u32 127, %v261_v2  ;;  %s370_s27 = sshll.u32 %s209_s26, 4  ;;  %s891_s7 = scalar_lea.hbm %s941_s2, %s494_s28  ;;  %s886_s27 = int_to_ptr.vmem [resolvable:$true] %s370_s27 }
  0x3e   : > { %500 = vmatpush3.bf16.xpose.msra.mxu0 %v584_v1  ;;  %506 = vmatpush3.bf16.msra.mxu1 %v584_v1  ;;  %s355_s8 = scalar_lea.sflag [#allocation4], %s865_s25  ;;  %s647_s15 = scalar_lea.vmem %s886_s27, 256 }
  0x3f   : > { %vm270_vm1 = vcmp.eq.s32.totalorder %v262_v3, %v269_v4  ;;  %v263_v5 = vadd.s32 8, %v262_v3  ;;  %p648_p8 = scmp.ne.s32.totalorder %s886_s27, %s647_s15  ;;  %s739_s12 = smov [#allocation7]  }
  0x40   : > { %s651_s30 = sshll.u32 %s739_s12, 4  ;;  %s652_s30 = int_to_ptr.vmem [resolvable:$false] %s651_s30 }
  0x41   : > { %vm271_vm3 = vcmp.eq.s32.totalorder %v263_v5, %v269_v4  ;;  %p649_p0 = pnand %p648_p8, %p808_p9  ;;  %s653_s4 = scalar_lea.vmem %s652_s30, 512 }
  0x42   : > { %p654_p5 = scmp.lt.s32.totalorder %s886_s27, %s652_s30  ;;  %p655_p6 = scmp.lt.s32.totalorder %s653_s4, %s647_s15 }
  0x43   : > { %p650_p2 = pneg %p649_p0 }
  0x44   : > { %p656_p4 = por %p655_p6, %p654_p5 }
  0x45   : > { %502 = vmatmul.mubr.bf16.vlgmr.msra.gmra.mxu0 %v584_v1 }
  0x46   : > { %p657_p7 = pnand %p656_p4, %p650_p2 }
 0x105   : > { %v254_v7 = vpop.f32.mrf.mxu0 }
 0x106   : > { %v272_v8 = vsel %vm270_vm1, 0.0, %v254_v7 }
 0x107   : > { %v281_v9 = vadd.f32 %v486_v6, %v272_v8  ;;  %v503_v10 = vpop.f32.mrf.mxu0 }
 0x109   : > { %v257_v11 = vpop.f32.mrf.mxu0  ;;  %v284_v12 = vsel %vm283_vm2, %v281_v9, -inf }
 0x10a   : > { %v273_v13 = vsel %vm271_vm3, 0.0, %v257_v11  ;;  %285 = vmax.xlane.f32.xlu0 %v284_v12 }
 0x10b   : > { %v282_v14 = vadd.f32 %v486_v6, %v273_v13  ;;  %v504_v15 = vpop.f32.mrf.mxu0 }
 0x10d   : > { %v287_v16 = vsel %vm283_vm2, %v282_v14, -inf }
 0x10e   : > { %288 = vmax.xlane.f32.xlu0 %v287_v16 }
 0x193   : > { %v286_v17 = vpop.xlane.xlu0 %285 }
 0x194   : > { %v290_v19 = vsub.f32 %v281_v9, %v286_v17 }
 0x197   : > { %v289_v18 = vpop.xlane.xlu0 %288 }
 0x198   : > { %v291_v20 = vsub.f32 %v282_v14, %v289_v18 }
 0x19a   : > { %v292_v21 = vpack.c.bf16 %v291_v20, %v290_v19 }
 0x19c   : > { %v294_v22 = vmul.bf16 1069105081, %v292_v21 }
 0x19e   : > { %585 = vpow.bf16 %v294_v22 }
 0x1ac   : > { %v586_v23 = vpop.eup %585 }
 0x1ad   : > { %508 = vmatmul.mubr.msk.bf16.vlgmr.msra.gmra.mxu1 %vm283_vm2, %v586_v23  ;;  %v296_v24 = vunpack.c.l.bf16 %v586_v23  ;;  %v297_v26 = vunpack.c.h.bf16 %v586_v23 }
 0x1af   : > { %v298_v25 = vsel %vm283_vm2, %v296_v24, 0.0  ;;  %v301_v27 = vsel %vm283_vm2, %v297_v26, 0.0 }
 0x1b0   : > { %299 = vadd.xlane.f32.xlu1 %v298_v25 }
 0x1b4   : > { %302 = vadd.xlane.f32.xlu1 %v301_v27 }
 0x239   : > { %v300_v28 = vpop.xlane.xlu1 %299 }
 0x23a   : > { %587 = vrcp.f32 %v300_v28 }
 0x23d   : > { %v303_v29 = vpop.xlane.xlu1 %302 }
 0x23e   : > { %589 = vrcp.f32 %v303_v29 }
 0x247   : > { %v588_v30 = vpop.eup %587 }
 0x24b   : > { %v590_v34 = vpop.eup %589 }
 0x26d   : > { %v341_v31 = vpop.f32.mrf.mxu1 }
 0x26e   : > { %v350_v32 = vmul.f32 %v588_v30, %v341_v31 }
 0x26f   : > { %v509_v33 = vpop.f32.mrf.mxu1 }
 0x270   : > { %352 = vst [vmem:[%s209_s26] sm:$0xff] %v350_v32 }
 0x271   : > { %v344_v35 = vpop.f32.mrf.mxu1 }
 0x272   : > { %v351_v36 = vmul.f32 %v590_v34, %v344_v35 }
 0x273   : > { %v510_v37 = vpop.f32.mrf.mxu1 }
 0x274   : > { %353 = vst [vmem:[%s209_s26 + $0x8] sm:$0xff] %v351_v36 }
 0x275   : > { %660 = shalt.err (!%p657_p7)
}
 0x276   : > { %s661_s6 = scalar_lea.hbm %s891_s7, 256  ;;  %s665_s19 = scalar_lea.hbm %s941_s2, 512 }
 0x277   : > { %p662_p1 = scmp.ne.s32.totalorder %s891_s7, %s661_s6  ;;  %p666_p3 = scmp.lt.s32.totalorder %s891_s7, %s941_s2 }
 0x278   : > { %p667_p8 = scmp.lt.s32.totalorder %s665_s19, %s661_s6 }
 0x279   : > { %p663_p10 = pnand %p662_p1, %p808_p9 }
 0x27a   : > { %p668_p0 = por %p667_p8, %p666_p3 }
 0x27b   : > { %p664_p13 = pneg %p663_p10 }
 0x27d   : > { %p669_p2 = pnand %p668_p0, %p664_p13 }
 0x27f   : > { %672 = shalt.err (!%p669_p2)
}
 0x280   : > { %s740_s21 = smov 128   ;;  %s741_s26 = smov 8  }
 0x281   : > { %515 = dma.vmem_to_hbm [thread:$0]  (%p808_p9), %s886_s27, 256, %s891_s7, %s355_s8, %s740_s21, %s740_s21, %s741_s26  }
 0x282 PF: > { %s385_s28 = sand.u32 1, %s711_s9   ;;  %p525_p5 = pnand %p477_p12, %p815_p11 }
 0x283   : > { %s386_s29 = scalar_lea.sflag [#allocation4], %s385_s28 }
 0x284   : > { %p526_p6 = pneg %p525_p5 }
 0x286   : > { %706 = dma.done.wait (%p526_p6), %s386_s29, 256  }
 0x287   : > { %708 = vsyncadd (%p526_p6), %s386_s29, 4294967040  ;;  %s21_s14 = sadd.s32 1, %s731_s14   ;;  %s948_s9 = smov %s715_s10 }
 0x288   : > { %p18_p4 = scmp.ge.s32.totalorder %s21_s14, 4   ;;  %s949_s10 = smov %s719_s11 }
 0x289   : > { %s950_s11 = smov %s813_s23  ;;  %s951_s12 = smov %s727_s13 }
 0x28a   : > { %s952_s13 = smov %s954_s17  ;;  %20 = sbr.rel (!%p18_p4) target bundleno = 8 (0x8), region = 86 }
 0x28f   :  { %391 = vsyncpa [#allocation3], 1 }
 0x290   :  { %393 = vsyncpa [#allocation3 + $0x1], 1 }
 0x291   :  { %394 = vsyncpa [#allocation6], 1 }
 0x292   :  { %396 = vsyncpa [#allocation6 + $0x1], 1 }
 0x293   :  { %397 = vsyncpa [#allocation4], 1 }
 0x294   :  { %399 = vsyncpa [#allocation4 + $0x1], 1 }

</bundles_post_ra>
